<compile_context>
chip_gen: v7x
topology: tpu7x:2x2x1
jax: 0.10.0
libtpu: 0.0.40
codegen_flags: <defaults>
</compile_context>

<pallas_src>
import jax
import jax.numpy as jnp
from jax.experimental import pallas as pl
from jax.experimental.pallas import tpu as pltpu

# TODO(synk): the BertModel encoder (self.model / encode_feature / tokenizer)
# has no clean Pallas equivalent here; pooled 768-d features are synthesized
# as kernel inputs.  self.similarity_network is unused in forward().

DIM = 768            # self.dim / BERT hidden size
OUT = 2              # nn.Linear(768, 2)
MAX_TM = 2048        # large-N row tile: 2048*768*4B = 6 MiB (12 MiB dbl-buffered)
SMALL_N_XLA = 4096   # below this, plain XLA is cheaper than a pallas_call


def _mlp_kernel(x_ref, w_ref, b_ref, o_ref):
    # x_ref: (TM, DIM) f32   w_ref: (DIM, OUT) f32
    # b_ref: (1, OUT) f32    o_ref: (TM, OUT) f32
    y = jnp.dot(x_ref[...], w_ref[...], preferred_element_type=jnp.float32)
    o_ref[...] = y + b_ref[...]


def _round_up(x, m):
    return ((x + m - 1) // m) * m


def _choose_tm(n):
    """Row tile: one block for N <= 2048, else 2048-row tiles (ragged tail ok)."""
    if n <= MAX_TM:
        return max(8, _round_up(n, 8))   # f32 input -> 8-row sublane granularity
    return MAX_TM


def gade_local_mlp(features, weight, bias, *, force_pallas=False):
    """features: (N, DIM) f32; weight: (DIM, OUT) f32; bias: (OUT,) f32.

    Returns (N, OUT) f32 = features @ weight + bias.
    """
    n, d = features.shape
    assert d == DIM and weight.shape == (DIM, OUT) and bias.shape == (OUT,)

    features = features.astype(jnp.float32)
    weight = weight.astype(jnp.float32)
    bias = bias.astype(jnp.float32)

    # Small-N fast path: let XLA fuse the tiny GEMV into neighboring ops.
    if not force_pallas and n < SMALL_N_XLA:
        return features @ weight + bias

    tm = _choose_tm(n)
    grid = (pl.cdiv(n, tm),)          # ragged last block handled by Pallas
    bias2d = bias.reshape(1, OUT)     # metadata-only reshape

    return pl.pallas_call(
        _mlp_kernel,
        out_shape=jax.ShapeDtypeStruct((n, OUT), jnp.float32),
        grid=grid,
        in_specs=[
            pl.BlockSpec((tm, DIM), lambda i: (i, 0)),
            pl.BlockSpec((DIM, OUT), lambda i: (0, 0)),   # VMEM-resident weight
            pl.BlockSpec((1, OUT), lambda i: (0, 0)),     # VMEM-resident bias
        ],
        out_specs=pl.BlockSpec((tm, OUT), lambda i: (i, 0)),
        compiler_params=pltpu.CompilerParams(
            # Rows are independent.  On v7x, pltpu.CORE_PARALLEL on this axis
            # could shard across the 2 TensorCores; kept portable here.
            dimension_semantics=("parallel",),
        ),
    )(features, weight, bias2d)


def gade_local_forward(pooled_features, labels, weight, bias, *, force_pallas=False):
    """Mirror of GADE_local.forward given pre-encoded pooled features.

    pooled_features: (batch, num_cand, DIM)  -- stands in for BERT pooled_output
    labels:          (batch, num_cand)
    returns: (features, label) like the torch module, with
             features = mlp(flattened pooled features), shape (batch*num_cand, 2)
    """
    b, g, d = pooled_features.shape
    flat = pooled_features.reshape(b * g, d)                        # .view(-1, 768)
    feats = gade_local_mlp(flat, weight, bias, force_pallas=force_pallas)
    label = labels.astype(jnp.float32)                              # torch.Tensor(label)
    return feats, label


if __name__ == "__main__":
    key = jax.random.PRNGKey(0)
    k_feat, k_w, k_b, k_lab, k_extra = jax.random.split(key, 5)

    batch, num_cand = 2, 8                     # small shapes; N = 16
    pooled = jax.random.normal(k_feat, (batch, num_cand, DIM), dtype=jnp.float32)
    labels = jax.random.randint(k_lab, (batch, num_cand), 0, 2)

    # Deterministic init of nn.Linear(768, 2): uniform(-1/sqrt(768), 1/sqrt(768))
    bound = 1.0 / (DIM ** 0.5)
    weight = jax.random.uniform(k_w, (DIM, OUT), jnp.float32, -bound, bound)
    bias = jax.random.uniform(k_b, (OUT,), jnp.float32, -bound, bound)

    # Force the Pallas path so the kernel itself is exercised at small N.
    feats, label = gade_local_forward(pooled, labels, weight, bias, force_pallas=True)
    feats = jax.block_until_ready(feats)
    label = jax.block_until_ready(label)

    assert feats.shape == (batch * num_cand, OUT)
    assert label.shape == (batch, num_cand)
    ref = pooled.reshape(-1, DIM) @ weight + bias
    assert float(jnp.max(jnp.abs(feats - ref))) < 2e-2

    # Secondary check: ragged N (not a multiple of the sublane tile) — exercises
    # the cdiv grid / padded-last-block path with no wrapper-side row padding.
    n_ragged = 21
    x_ragged = jax.random.normal(k_extra, (n_ragged, DIM), dtype=jnp.float32)
    out_ragged = jax.block_until_ready(
        gade_local_mlp(x_ragged, weight, bias, force_pallas=True))
    ref_ragged = x_ragged @ weight + bias
    assert out_ragged.shape == (n_ragged, OUT)
    assert float(jnp.max(jnp.abs(out_ragged - ref_ragged))) < 2e-2

    print("KERNEL_OK")
</pallas_src>

<mosaic_0001>
module attributes {stable_mosaic.version = 11 : i64} {
  func.func @_mlp_kernel(%arg0: i32, %arg1: memref<16x768xf32, #tpu.memory_space<vmem>>, %arg2: memref<768x2xf32, #tpu.memory_space<vmem>>, %arg3: memref<1x2xf32, #tpu.memory_space<vmem>>, %arg4: memref<16x2xf32, #tpu.memory_space<vmem>>) attributes {dimension_semantics = [#tpu.dimension_semantics<parallel>], iteration_bounds = array<i64: 1>, scalar_prefetch = 0 : i64, scratch_operands = 0 : i64, tpu.core_type = #tpu.core_type<tc>, window_params = [{transform_indices = @transform_0, window_bounds = array<i64: 16, 768>}, {pipeline_mode = #tpu.pipeline_mode<synchronous>, transform_indices = @transform_1, window_bounds = array<i64: 768, 2>}, {pipeline_mode = #tpu.pipeline_mode<synchronous>, transform_indices = @transform_2, window_bounds = array<i64: 1, 2>}, {transform_indices = @transform_3, window_bounds = array<i64: 16, 2>}]} {
    %c0 = arith.constant 0 : index
    %c0_0 = arith.constant 0 : index
    %0 = vector.load %arg1[%c0, %c0_0] : memref<16x768xf32, #tpu.memory_space<vmem>>, vector<16x768xf32>
    %c0_1 = arith.constant 0 : index
    %c0_2 = arith.constant 0 : index
    %1 = vector.load %arg2[%c0_1, %c0_2] : memref<768x2xf32, #tpu.memory_space<vmem>>, vector<768x2xf32>
    %cst = arith.constant dense<0.000000e+00> : vector<16x2xf32>
    %2 = tpu.matmul %0, %1, %cst {dimension_numbers = #tpu.dot_dimension_numbers<[1], [0], [0], [1], [0, 0, 1, 1], [], []>} : vector<16x768xf32>, vector<768x2xf32>, vector<16x2xf32> -> vector<16x2xf32>
    %c0_3 = arith.constant 0 : index
    %c0_4 = arith.constant 0 : index
    %3 = vector.load %arg3[%c0_3, %c0_4] : memref<1x2xf32, #tpu.memory_space<vmem>>, vector<1x2xf32>
    %4 = vector.broadcast %3 : vector<1x2xf32> to vector<16x2xf32>
    %5 = arith.addf %2, %4 : vector<16x2xf32>
    %c0_5 = arith.constant 0 : index
    %c0_6 = arith.constant 0 : index
    %6 = vector.load %arg4[%c0_5, %c0_6] : memref<16x2xf32, #tpu.memory_space<vmem>>, vector<16x2xf32>
    tpu.vector_store %arg4[%c0_5, %c0_6], %5 {strides = array<i32>} : memref<16x2xf32, #tpu.memory_space<vmem>>, vector<16x2xf32>,
    return
  }
  func.func @transform_0(%arg0: i32) -> (i32, i32) {
    %c0_i32 = arith.constant 0 : i32
    %c0_i32_0 = arith.constant 0 : i32
    return %arg0, %c0_i32 : i32, i32
  }
  func.func @transform_1(%arg0: i32) -> (i32, i32) {
    %c0_i32 = arith.constant 0 : i32
    %c0_i32_0 = arith.constant 0 : i32
    %c0_i32_1 = arith.constant 0 : i32
    return %c0_i32, %c0_i32_0 : i32, i32
  }
  func.func @transform_2(%arg0: i32) -> (i32, i32) {
    %c0_i32 = arith.constant 0 : i32
    %c0_i32_0 = arith.constant 0 : i32
    %c0_i32_1 = arith.constant 0 : i32
    return %c0_i32, %c0_i32_0 : i32, i32
  }
  func.func @transform_3(%arg0: i32) -> (i32, i32) {
    %c0_i32 = arith.constant 0 : i32
    %c0_i32_0 = arith.constant 0 : i32
    return %arg0, %c0_i32 : i32, i32
  }
}

</mosaic_0001>

<bundles_post_ra>
// kernel: tpu_custom_call.1
= control target key start
LH: loop header
LB: loop body
LE: loop exit
PB: predicated region body
PF: predicated region fallthrough
CT: control target
= control target key end

     0   :  { %vm354_vm0 = vcmask 15360   ;;  %s941_s1 = inlined_call_operand.vmem [shape: f32[768,2], index: 1, kind: input, shape index: {}]   ;;  %s942_s0 = inlined_call_operand.vmem [shape: f32[16,768], index: 0, kind: input, shape index: {}]   ;;  %s943_s2 = inlined_call_operand.vmem [shape: f32[1,2], index: 2, kind: input, shape index: {}]   ;;  %s944_s3 = inlined_call_operand.vmem [shape: f32[16,2], index: 3, kind: output, shape index: {}]  }
   0x1   :  { %v42_v0 = vld [vmem:[%s941_s1 + $0x80] sm:$0xff]  ;;  %v43_v1 = vld [vmem:[%s941_s1 + $0x88] sm:$0xff]  ;;  %v44_v11 = vld [vmem:[%s941_s1 + $0x90] sm:$0xff] }
   0x2   :  { %v74_v2 = vld [vmem:[%s941_s1 + $0x180] sm:$0xff]  ;;  %v476_v3 = vpack.c.bf16 %v43_v1, %v42_v0  ;;  %v75_v4 = vld [vmem:[%s941_s1 + $0x188] sm:$0xff]  ;;  %v45_v13 = vld [vmem:[%s941_s1 + $0x98] sm:$0xff] }
   0x3   :  { %v26_v5 = vld [vmem:[%s941_s1] sm:$0xff]  ;;  %v27_v6 = vld [vmem:[%s941_s1 + $0x8] sm:$0xff]  ;;  %v508_v7 = vpack.c.bf16 %v75_v4, %v74_v2  ;;  %v76_v14 = vld [vmem:[%s941_s1 + $0x190] sm:$0xff]  ;;  %v480_v16 = vpack.c.bf16 %v45_v13, %v44_v11 }
   0x4   :  { %v478_v8 = vpack.c.bf16 %v27_v6, %v26_v5  ;;  %v58_v9 = vld [vmem:[%s941_s1 + $0x100] sm:$0xff]  ;;  %v59_v10 = vld [vmem:[%s941_s1 + $0x108] sm:$0xff]  ;;  %477 = vmatprep.subr.bf16.mxu0 %v476_v3  ;;  %v77_v15 = vld [vmem:[%s941_s1 + $0x198] sm:$0xff] }
   0x5   :  { %v510_v12 = vpack.c.bf16 %v59_v10, %v58_v9  ;;  %509 = vmatprep.subr.bf16.mxu1 %v508_v7  ;;  %v512_v17 = vpack.c.bf16 %v77_v15, %v76_v14  ;;  %v28_v18 = vld [vmem:[%s941_s1 + $0x10] sm:$0xff]  ;;  %v29_v19 = vld [vmem:[%s941_s1 + $0x18] sm:$0xff]  ;;  %v46_v23 = vld [vmem:[%s941_s1 + $0xa0] sm:$0xff] }
   0x6   :  { %479 = vmatpush3.bf16.msra.mxu0 %v478_v8  ;;  %v60_v20 = vld [vmem:[%s941_s1 + $0x110] sm:$0xff]  ;;  %v482_v21 = vpack.c.bf16 %v29_v19, %v28_v18  ;;  %v61_v22 = vld [vmem:[%s941_s1 + $0x118] sm:$0xff]  ;;  %v47_v24 = vld [vmem:[%s941_s1 + $0xa8] sm:$0xff] }
   0x7   :  { %511 = vmatpush3.bf16.msra.mxu1 %v510_v12  ;;  %481 = vmatprep.subr.bf16.mxu0 %v480_v16  ;;  %v514_v25 = vpack.c.bf16 %v61_v22, %v60_v20  ;;  %v484_v26 = vpack.c.bf16 %v47_v24, %v46_v23  ;;  %v78_v27 = vld [vmem:[%s941_s1 + $0x1a0] sm:$0xff]  ;;  %v79_v28 = vld [vmem:[%s941_s1 + $0x1a8] sm:$0xff]  ;;  %v48_v35 = vld [vmem:[%s941_s1 + $0xb0] sm:$0xff] }
   0x8   :  { %513 = vmatprep.subr.bf16.mxu1 %v512_v17  ;;  %v30_v29 = vld [vmem:[%s941_s1 + $0x20] sm:$0xff]  ;;  %v516_v30 = vpack.c.bf16 %v79_v28, %v78_v27  ;;  %v31_v31 = vld [vmem:[%s941_s1 + $0x28] sm:$0xff]  ;;  %v49_v36 = vld [vmem:[%s941_s1 + $0xb8] sm:$0xff] }
   0x9   :  { %v62_v32 = vld [vmem:[%s941_s1 + $0x120] sm:$0xff]  ;;  %v63_v33 = vld [vmem:[%s941_s1 + $0x128] sm:$0xff]  ;;  %v486_v34 = vpack.c.bf16 %v31_v31, %v30_v29  ;;  %v80_v37 = vld [vmem:[%s941_s1 + $0x1b0] sm:$0xff]  ;;  %v488_v39 = vpack.c.bf16 %v49_v36, %v48_v35 }
   0xa   :  { %483 = vmatpush3.bf16.msra.mxu0 %v482_v21  ;;  %v518_v38 = vpack.c.bf16 %v63_v33, %v62_v32  ;;  %v81_v40 = vld [vmem:[%s941_s1 + $0x1b8] sm:$0xff]  ;;  %v32_v41 = vld [vmem:[%s941_s1 + $0x30] sm:$0xff]  ;;  %v50_v46 = vld [vmem:[%s941_s1 + $0xc0] sm:$0xff] }
   0xb   :  { %515 = vmatpush3.bf16.msra.mxu1 %v514_v25  ;;  %485 = vmatprep.subr.bf16.mxu0 %v484_v26  ;;  %v33_v42 = vld [vmem:[%s941_s1 + $0x38] sm:$0xff]  ;;  %v520_v43 = vpack.c.bf16 %v81_v40, %v80_v37  ;;  %v64_v44 = vld [vmem:[%s941_s1 + $0x130] sm:$0xff]  ;;  %v51_v47 = vld [vmem:[%s941_s1 + $0xc8] sm:$0xff] }
   0xc   :  { %517 = vmatprep.subr.bf16.mxu1 %v516_v30  ;;  %v65_v45 = vld [vmem:[%s941_s1 + $0x138] sm:$0xff]  ;;  %v82_v48 = vld [vmem:[%s941_s1 + $0x1c0] sm:$0xff]  ;;  %v83_v49 = vld [vmem:[%s941_s1 + $0x1c8] sm:$0xff]  ;;  %v490_v50 = vpack.c.bf16 %v33_v42, %v32_v41  ;;  %v492_v52 = vpack.c.bf16 %v51_v47, %v50_v46 }
   0xd   :  { %v522_v51 = vpack.c.bf16 %v65_v45, %v64_v44  ;;  %v34_v53 = vld [vmem:[%s941_s1 + $0x40] sm:$0xff]  ;;  %v35_v54 = vld [vmem:[%s941_s1 + $0x48] sm:$0xff]  ;;  %v524_v56 = vpack.c.bf16 %v83_v49, %v82_v48  ;;  %v52_v58 = vld [vmem:[%s941_s1 + $0xd0] sm:$0xff] }
   0xe   :  { %487 = vmatpush3.bf16.msra.mxu0 %v486_v34  ;;  %v66_v55 = vld [vmem:[%s941_s1 + $0x140] sm:$0xff]  ;;  %v67_v57 = vld [vmem:[%s941_s1 + $0x148] sm:$0xff]  ;;  %v53_v59 = vld [vmem:[%s941_s1 + $0xd8] sm:$0xff]  ;;  %v494_v62 = vpack.c.bf16 %v35_v54, %v34_v53 }
   0xf   :  { %519 = vmatpush3.bf16.msra.mxu1 %v518_v38  ;;  %489 = vmatprep.subr.bf16.mxu0 %v488_v39  ;;  %v84_v60 = vld [vmem:[%s941_s1 + $0x1d0] sm:$0xff]  ;;  %v85_v61 = vld [vmem:[%s941_s1 + $0x1d8] sm:$0xff]  ;;  %v526_v63 = vpack.c.bf16 %v67_v57, %v66_v55  ;;  %v496_v0 = vpack.c.bf16 %v53_v59, %v52_v58  ;;  %v54_v6 = vld [vmem:[%s941_s1 + $0xe0] sm:$0xff] }
  0x10   :  { %521 = vmatprep.subr.bf16.mxu1 %v520_v43  ;;  %v36_v1 = vld [vmem:[%s941_s1 + $0x50] sm:$0xff]  ;;  %v37_v2 = vld [vmem:[%s941_s1 + $0x58] sm:$0xff]  ;;  %v528_v4 = vpack.c.bf16 %v85_v61, %v84_v60  ;;  %v55_v7 = vld [vmem:[%s941_s1 + $0xe8] sm:$0xff] }
  0x11   :  { %v68_v3 = vld [vmem:[%s941_s1 + $0x150] sm:$0xff]  ;;  %v69_v5 = vld [vmem:[%s941_s1 + $0x158] sm:$0xff]  ;;  %v86_v8 = vld [vmem:[%s941_s1 + $0x1e0] sm:$0xff]  ;;  %v498_v10 = vpack.c.bf16 %v37_v2, %v36_v1  ;;  %v500_v14 = vpack.c.bf16 %v55_v7, %v54_v6 }
  0x12   :  { %491 = vmatpush3.bf16.msra.mxu0 %v490_v50  ;;  %v87_v9 = vld [vmem:[%s941_s1 + $0x1e8] sm:$0xff]  ;;  %v38_v11 = vld [vmem:[%s941_s1 + $0x60] sm:$0xff]  ;;  %v530_v13 = vpack.c.bf16 %v69_v5, %v68_v3  ;;  %v17_v17 = vld [vmem:[%s942_s0 + $0x18] sm:$0xff] }
  0x13   :  { %523 = vmatpush3.bf16.msra.mxu1 %v522_v51  ;;  %493 = vmatprep.subr.bf16.mxu0 %v492_v52  ;;  %v39_v12 = vld [vmem:[%s941_s1 + $0x68] sm:$0xff]  ;;  %v70_v15 = vld [vmem:[%s941_s1 + $0x160] sm:$0xff]  ;;  %v532_v18 = vpack.c.bf16 %v87_v9, %v86_v8  ;;  %v56_v20 = vld [vmem:[%s941_s1 + $0xf0] sm:$0xff] }
  0x14   :  { %525 = vmatprep.subr.bf16.mxu1 %v524_v56  ;;  %v15_v16 = vld [vmem:[%s942_s0 + $0x8] sm:$0xff]  ;;  %v57_v21 = vld [vmem:[%s941_s1 + $0xf8] sm:$0xff]  ;;  %v88_v22 = vld [vmem:[%s941_s1 + $0x1f0] sm:$0xff]  ;;  %268 = vmatprep.mubr.f32.mxu1 %v17_v17  ;;  %v502_v24 = vpack.c.bf16 %v39_v12, %v38_v11 }
  0x15   :  { %v71_v19 = vld [vmem:[%s941_s1 + $0x168] sm:$0xff]  ;;  %193 = vmatprep.mubr.f32.mxu0 %v15_v16  ;;  %v89_v23 = vld [vmem:[%s941_s1 + $0x1f8] sm:$0xff]  ;;  %v504_v26 = vpack.c.bf16 %v57_v21, %v56_v20  ;;  %v40_v27 = vld [vmem:[%s941_s1 + $0x70] sm:$0xff] }
  0x16   :  { %495 = vmatpush3.bf16.msra.mxu0 %v494_v62  ;;  %v534_v25 = vpack.c.bf16 %v71_v19, %v70_v15  ;;  %v41_v28 = vld [vmem:[%s941_s1 + $0x78] sm:$0xff]  ;;  %v72_v29 = vld [vmem:[%s941_s1 + $0x170] sm:$0xff]  ;;  %v536_v30 = vpack.c.bf16 %v89_v23, %v88_v22  ;;  %v106_v32 = vld [vmem:[%s941_s1 + $0x280] sm:$0xff] }
  0x17   :  { %527 = vmatpush3.bf16.msra.mxu1 %v526_v63  ;;  %497 = vmatprep.subr.bf16.mxu0 %v496_v0  ;;  %v73_v31 = vld [vmem:[%s941_s1 + $0x178] sm:$0xff]  ;;  %v107_v33 = vld [vmem:[%s941_s1 + $0x288] sm:$0xff]  ;;  %v506_v34 = vpack.c.bf16 %v41_v28, %v40_v27  ;;  %v90_v37 = vld [vmem:[%s941_s1 + $0x200] sm:$0xff] }
  0x18   :  { %529 = vmatprep.subr.bf16.mxu1 %v528_v4  ;;  %v538_v35 = vpack.c.bf16 %v73_v31, %v72_v29  ;;  %v540_v36 = vpack.c.bf16 %v107_v33, %v106_v32  ;;  %v91_v38 = vld [vmem:[%s941_s1 + $0x208] sm:$0xff]  ;;  %v108_v39 = vld [vmem:[%s941_s1 + $0x290] sm:$0xff]  ;;  %v109_v40 = vld [vmem:[%s941_s1 + $0x298] sm:$0xff] }
  0x19   :  { %v14_v41 = vld [vmem:[%s942_s0] sm:$0xff]  ;;  %v542_v42 = vpack.c.bf16 %v91_v38, %v90_v37  ;;  %v16_v43 = vld [vmem:[%s942_s0 + $0x10] sm:$0xff]  ;;  %v544_v44 = vpack.c.bf16 %v109_v40, %v108_v39  ;;  %v93_v46 = vld [vmem:[%s941_s1 + $0x218] sm:$0xff] }
  0x1a   :  { %499 = vmatpush3.bf16.msra.mxu0 %v498_v10  ;;  %v92_v45 = vld [vmem:[%s941_s1 + $0x210] sm:$0xff]  ;;  %v110_v47 = vld [vmem:[%s941_s1 + $0x2a0] sm:$0xff]  ;;  %v111_v48 = vld [vmem:[%s941_s1 + $0x2a8] sm:$0xff] }
  0x1b   :  { %531 = vmatpush3.bf16.msra.mxu1 %v530_v13  ;;  %501 = vmatprep.subr.bf16.mxu0 %v500_v14  ;;  %v21_v49 = vld [vmem:[%s942_s0 + $0x38] sm:$0xff]  ;;  %v546_v50 = vpack.c.bf16 %v93_v46, %v92_v45  ;;  %v20_v51 = vld [vmem:[%s942_s0 + $0x30] sm:$0xff]  ;;  %v23_v52 = vld [vmem:[%s942_s0 + $0x48] sm:$0xff]  ;;  %v548_v53 = vpack.c.bf16 %v111_v48, %v110_v47 }
  0x1c   :  { %533 = vmatprep.subr.bf16.mxu1 %v532_v18  ;;  %v94_v54 = vld [vmem:[%s941_s1 + $0x220] sm:$0xff]  ;;  %v95_v55 = vld [vmem:[%s941_s1 + $0x228] sm:$0xff]  ;;  %v112_v57 = vld [vmem:[%s941_s1 + $0x2b0] sm:$0xff] }
  0x1d   :  { %v22_v56 = vld [vmem:[%s942_s0 + $0x40] sm:$0xff]  ;;  %v113_v58 = vld [vmem:[%s941_s1 + $0x2b8] sm:$0xff]  ;;  %v19_v59 = vld [vmem:[%s942_s0 + $0x28] sm:$0xff]  ;;  %v550_v60 = vpack.c.bf16 %v95_v55, %v94_v54 }
  0x1e   :  { %503 = vmatpush3.bf16.msra.mxu0 %v502_v24  ;;  %v25_v61 = vld [vmem:[%s942_s0 + $0x58] sm:$0xff]  ;;  %v552_v62 = vpack.c.bf16 %v113_v58, %v112_v57  ;;  %v96_v63 = vld [vmem:[%s941_s1 + $0x230] sm:$0xff]  ;;  %v114_v1 = vld [vmem:[%s941_s1 + $0x2c0] sm:$0xff] }
  0x1f   :  { %535 = vmatpush3.bf16.msra.mxu1 %v534_v25  ;;  %505 = vmatprep.subr.bf16.mxu0 %v504_v26  ;;  %v97_v0 = vld [vmem:[%s941_s1 + $0x238] sm:$0xff]  ;;  %v115_v2 = vld [vmem:[%s941_s1 + $0x2c8] sm:$0xff]  ;;  %v98_v5 = vld [vmem:[%s941_s1 + $0x240] sm:$0xff] }
  0x20   :  { %537 = vmatprep.subr.bf16.mxu1 %v536_v30  ;;  %v554_v3 = vpack.c.bf16 %v97_v0, %v96_v63  ;;  %v556_v4 = vpack.c.bf16 %v115_v2, %v114_v1  ;;  %v99_v6 = vld [vmem:[%s941_s1 + $0x248] sm:$0xff]  ;;  %v116_v7 = vld [vmem:[%s941_s1 + $0x2d0] sm:$0xff]  ;;  %v117_v8 = vld [vmem:[%s941_s1 + $0x2d8] sm:$0xff] }
  0x21   :  { %v558_v9 = vpack.c.bf16 %v99_v6, %v98_v5  ;;  %v560_v10 = vpack.c.bf16 %v117_v8, %v116_v7  ;;  %v100_v11 = vld [vmem:[%s941_s1 + $0x250] sm:$0xff]  ;;  %v101_v12 = vld [vmem:[%s941_s1 + $0x258] sm:$0xff]  ;;  %v118_v13 = vld [vmem:[%s941_s1 + $0x2e0] sm:$0xff] }
  0x22   :  { %507 = vmatpush3.bf16.msra.mxu0 %v506_v34  ;;  %v119_v14 = vld [vmem:[%s941_s1 + $0x2e8] sm:$0xff]  ;;  %v562_v15 = vpack.c.bf16 %v101_v12, %v100_v11  ;;  %v102_v17 = vld [vmem:[%s941_s1 + $0x260] sm:$0xff]  ;;  %v120_v19 = vld [vmem:[%s941_s1 + $0x2f0] sm:$0xff] }
  0x23   :  { %539 = vmatpush3.bf16.msra.mxu1 %v538_v35  ;;  %541 = vmatprep.subr.bf16.mxu0 %v540_v36  ;;  %v564_v16 = vpack.c.bf16 %v119_v14, %v118_v13  ;;  %v103_v18 = vld [vmem:[%s941_s1 + $0x268] sm:$0xff]  ;;  %v121_v20 = vld [vmem:[%s941_s1 + $0x2f8] sm:$0xff]  ;;  %v104_v23 = vld [vmem:[%s941_s1 + $0x270] sm:$0xff] }
  0x24   :  { %572 = vmatprep.subr.bf16.mxu1 %v540_v36  ;;  %v566_v21 = vpack.c.bf16 %v103_v18, %v102_v17  ;;  %v568_v22 = vpack.c.bf16 %v121_v20, %v120_v19  ;;  %v105_v24 = vld [vmem:[%s941_s1 + $0x278] sm:$0xff]  ;;  %v18_v26 = vld [vmem:[%s942_s0 + $0x20] sm:$0xff]  ;;  %v24_v27 = vld [vmem:[%s942_s0 + $0x50] sm:$0xff] }
  0x25   :  { %194 = vmatmul.mubr.f32.vlgmr.msra.gmra.mrb[0].mxu0 %v14_v41  ;;  %v570_v25 = vpack.c.bf16 %v105_v24, %v104_v23  ;;  %v361_v30 = vld [vmem:[%s943_s2] ss:$0 sm:$0xff] }
  0x26   :  { %269 = vmatmul.mubr.f32.vlgmr.msra.gmra.mrb[0].mxu1 %v16_v43  ;;  %543 = vmatpush3.bf16.msra.mxu0 %v542_v42 }
  0x27   :  { %580 = vmatpush3.bf16.msra.mxu1 %v542_v42  ;;  %545 = vmatprep.subr.bf16.mxu0 %v544_v44 }
  0x28   :  { %573 = vmatprep.subr.bf16.mxu1 %v544_v44  ;;  %198 = vmatprep.mubr.f32.mxu0 %v21_v49 }
  0x29   :  { %199 = vmatmul.mubr.f32.gmra.mrb[2].mxu0 %v20_v51  ;;  %273 = vmatprep.mubr.f32.mxu1 %v23_v52 }
  0x2a   :  { %547 = vmatpush3.bf16.msra.mxu0 %v546_v50  ;;  %274 = vmatmul.mubr.f32.gmra.mrb[2].mxu1 %v22_v56 }
  0x2b   :  { %581 = vmatpush3.bf16.msra.mxu1 %v546_v50  ;;  %549 = vmatprep.subr.bf16.mxu0 %v548_v53 }
  0x2c   :  { %574 = vmatprep.subr.bf16.mxu1 %v548_v53  ;;  %343 = vmatprep.mubr.f32.mxu0 %v19_v59 }
  0x2d   :  { %348 = vmatprep.mubr.f32.mxu1 %v25_v61 }
  0x2e   :  { %551 = vmatpush3.bf16.msra.mxu0 %v550_v60 }
  0x2f   :  { %582 = vmatpush3.bf16.msra.mxu1 %v550_v60  ;;  %553 = vmatprep.subr.bf16.mxu0 %v552_v62 }
  0x30   :  { %575 = vmatprep.subr.bf16.mxu1 %v552_v62 }
  0x32   :  { %555 = vmatpush3.bf16.msra.mxu0 %v554_v3 }
  0x33   :  { %583 = vmatpush3.bf16.msra.mxu1 %v554_v3  ;;  %557 = vmatprep.subr.bf16.mxu0 %v556_v4 }
  0x34   :  { %576 = vmatprep.subr.bf16.mxu1 %v556_v4 }
  0x36   :  { %559 = vmatpush3.bf16.msra.mxu0 %v558_v9 }
  0x37   :  { %584 = vmatpush3.bf16.msra.mxu1 %v558_v9  ;;  %561 = vmatprep.subr.bf16.mxu0 %v560_v10 }
  0x38   :  { %577 = vmatprep.subr.bf16.mxu1 %v560_v10 }
  0x3a   :  { %563 = vmatpush3.bf16.msra.mxu0 %v562_v15 }
  0x3b   :  { %585 = vmatpush3.bf16.msra.mxu1 %v562_v15  ;;  %565 = vmatprep.subr.bf16.mxu0 %v564_v16 }
  0x3c   :  { %578 = vmatprep.subr.bf16.mxu1 %v564_v16 }
  0x3e   :  { %567 = vmatpush3.bf16.msra.mxu0 %v566_v21 }
  0x3f   :  { %586 = vmatpush3.bf16.msra.mxu1 %v566_v21  ;;  %569 = vmatprep.subr.bf16.mxu0 %v568_v22 }
  0x40   :  { %579 = vmatprep.subr.bf16.mxu1 %v568_v22 }
  0x42   :  { %571 = vmatpush3.bf16.msra.mxu0 %v570_v25 }
  0x43   :  { %587 = vmatpush3.bf16.msra.mxu1 %v570_v25 }
  0x45   :  { %344 = vmatmul.mubr.f32.vlgmr.msra.gmra.mrb[4].mxu0 %v18_v26 }
  0x46   :  { %349 = vmatmul.mubr.f32.vlgmr.msra.gmra.mrb[4].mxu1 %v24_v27 }
  0xf8   :  { %v394_v28 = vpop.f32.mrb[0].mxu0 }
  0xf9   :  { %v432_v29 = vpop.f32.mrb[0].mxu1  ;;  %v395_v31 = vpop.f32.mrb[1].mxu0 }
  0xfa   :  { %v396_v32 = vadd.f32 %v395_v31, %v394_v28  ;;  %v433_v33 = vpop.f32.mrb[1].mxu1 }
  0xfb   :  { %v434_v34 = vadd.f32 %v433_v33, %v432_v29 }
  0xfc   :  { %v196_v35 = vadd.f32 %v396_v32, %v361_v30  ;;  %v397_v36 = vpop.f32.mrb[2].mxu0 }
  0xfd   :  { %v398_v37 = vpop.f32.mrb[3].mxu0  ;;  %v435_v38 = vpop.f32.mrb[2].mxu1 }
  0xfe   :  { %v271_v39 = vadd.f32 %v434_v34, %v196_v35  ;;  %v399_v40 = vadd.f32 %v398_v37, %v397_v36  ;;  %v436_v41 = vpop.f32.mrb[3].mxu1 }
  0xff   :  { %v437_v42 = vadd.f32 %v436_v41, %v435_v38 }
 0x100   :  { %v201_v43 = vadd.f32 %v399_v40, %v361_v30 }
 0x102   :  { %v276_v44 = vadd.f32 %v437_v42, %v201_v43 }
 0x118   :  { %v470_v45 = vpop.f32.mrb[4].mxu0 }
 0x119   :  { %v473_v46 = vpop.f32.mrb[4].mxu1  ;;  %v471_v47 = vpop.f32.mrb[5].mxu0 }
 0x11a   :  { %v472_v48 = vadd.f32 %v471_v47, %v470_v45  ;;  %v474_v49 = vpop.f32.mrb[5].mxu1 }
 0x11b   :  { %v475_v50 = vadd.f32 %v474_v49, %v473_v46 }
 0x11c   :  { %v346_v51 = vadd.f32 %v472_v48, %v271_v39 }
 0x11d   :  { %v351_v52 = vadd.f32 %v475_v50, %v276_v44 }
 0x11e   :  { %355 = vst.msk [vmem:[%s944_s3] sm:$0xff] %vm354_vm0, %v346_v51 }
 0x11f   :  { %356 = vst.msk [vmem:[%s944_s3 + $0x8] sm:$0xff] %vm354_vm0, %v351_v52 }

</bundles_post_ra>
